<compile_context>
chip_gen: v6e
topology: v6e:2x2x1
jax: 0.10.0
libtpu: 0.0.40
codegen_flags: <defaults>
</compile_context>

<pallas_src>
import jax
import jax.numpy as jnp
from jax.experimental import pallas as pl
from jax.experimental.pallas import tpu as pltpu

HIDDEN = 128  # fixed inner width of MLP_Decoder


def _mlp_decoder_kernel(skips_ref, x_ref,
                        w1_ref, w2_ref, w3_ref, w4_ref, wf_ref,
                        b_ref, bf_ref, out_ref):
    # Residual-add scalars (already rescaled in the wrapper), from SMEM.
    s13 = skips_ref[0]
    s14 = skips_ref[1]
    s24 = skips_ref[2]

    mm_dtype = w1_ref.dtype  # bf16 (default) or f32

    x = x_ref[...]                                           # (tile_b, hdim) f32

    h1 = jnp.maximum(
        jnp.dot(x.astype(mm_dtype), w1_ref[...],
                preferred_element_type=jnp.float32) + b_ref[0:1, :], 0.0)

    # (1+s12) already folded into W2.
    h2 = jnp.maximum(
        jnp.dot(h1.astype(mm_dtype), w2_ref[...],
                preferred_element_type=jnp.float32) + b_ref[1:2, :], 0.0)

    # (1+s23) folded into W3; s13 rescaled by 1/(1+s23).
    h3_in = h2 + s13 * h1
    h3 = jnp.maximum(
        jnp.dot(h3_in.astype(mm_dtype), w3_ref[...],
                preferred_element_type=jnp.float32) + b_ref[2:3, :], 0.0)

    # (1+s34) folded into W4; s24/s14 rescaled by 1/(1+s34).
    h4_in = h3 + s24 * h2 + s14 * h1
    h4 = jnp.maximum(
        jnp.dot(h4_in.astype(mm_dtype), w4_ref[...],
                preferred_element_type=jnp.float32) + b_ref[3:4, :], 0.0)

    logits = jnp.dot(h4.astype(mm_dtype), wf_ref[...],
                     preferred_element_type=jnp.float32) + bf_ref[...]
    out_ref[...] = jax.nn.sigmoid(logits).astype(out_ref.dtype)


def mlp_decoder_forward(h, params, *, tile_b=None, use_bf16=True):
    """MLP_Decoder forward.

    h:      (B, hdim) float32.
    params: weights in (in, out) layout, biases (out,),
            skips = [s_1to2, s_1to3, s_1to4, s_2to3, s_2to4, s_3to4].
    """
    w1, b1 = params["w1"], params["b1"]
    w2, b2 = params["w2"], params["b2"]
    w3, b3 = params["w3"], params["b3"]
    w4, b4 = params["w4"], params["b4"]
    wf, bf = params["wf"], params["bf"]
    skips = params["skips"].astype(jnp.float32)              # (6,)

    B, hdim = h.shape
    nclass = wf.shape[1]

    # ---- fold the pre-scales into the weights -------------------------------
    # (1+s) > 0 always holds for the torch.rand(1) initialization of the
    # reference module, so the rescaled residual coefficients are well defined.
    one_s12 = 1.0 + skips[0]
    one_s23 = 1.0 + skips[3]
    one_s34 = 1.0 + skips[5]
    w2f = w2 * one_s12
    w3f = w3 * one_s23
    w4f = w4 * one_s34
    skips_adj = jnp.stack([skips[1] / one_s23,      # s13 / (1+s23)
                           skips[2] / one_s34,      # s14 / (1+s34)
                           skips[4] / one_s34])     # s24 / (1+s34)
    skips_adj = skips_adj.astype(jnp.float32)

    mm_dtype = jnp.bfloat16 if use_bf16 else jnp.float32
    w1m = w1.astype(mm_dtype)
    w2m = w2f.astype(mm_dtype)
    w3m = w3f.astype(mm_dtype)
    w4m = w4f.astype(mm_dtype)
    wfm = wf.astype(mm_dtype)

    # Biases: b1..b4 packed into one resident (4, 128) operand; bf as (1, nclass).
    bstack = jnp.stack([b1, b2, b3, b4]).astype(jnp.float32)  # (4, HIDDEN)
    bfr = bf.reshape(1, nclass).astype(jnp.float32)

    # ---- batch tiling --------------------------------------------------------
    # Multiple of 8 sublanes; big enough to amortize the ~0.35us/step overhead,
    # small enough that h1..h4 intermediates + double-buffered I/O stay tiny.
    if tile_b is None:
        tile_b = 512
    tile_b = max(8, min(int(tile_b), 2048))
    tile_b = (tile_b // 8) * 8
    tile_b = min(tile_b, 8 * pl.cdiv(B, 8))       # never larger than padded B
    grid = (pl.cdiv(B, tile_b),)                  # ragged tail handled by Pallas

    def resident(arr):
        # Full-array block, constant index map -> DMA once, reuse every step.
        return pl.BlockSpec(arr.shape, lambda i: (0, 0))

    cost = pl.CostEstimate(
        flops=2 * B * (hdim * HIDDEN + 3 * HIDDEN * HIDDEN + HIDDEN * nclass),
        transcendentals=B * nclass,
        bytes_accessed=(4 * B * (hdim + nclass)
                        + mm_dtype.dtype.itemsize * (hdim * HIDDEN
                                                     + 3 * HIDDEN * HIDDEN
                                                     + HIDDEN * nclass)
                        + 4 * (4 * HIDDEN + nclass + 3)),
    )

    # ---- VMEM budget: weights + double-buffered I/O tiles + intermediates ----
    wbytes = mm_dtype.dtype.itemsize * (hdim * HIDDEN + 3 * HIDDEN * HIDDEN
                                        + HIDDEN * nclass) + 4 * (4 * HIDDEN + nclass)
    io_bytes = 2 * 2 * 4 * tile_b * (hdim + nclass)
    act_bytes = 6 * 4 * tile_b * HIDDEN
    vmem_limit = wbytes + io_bytes + act_bytes + (4 << 20)
    vmem_limit = int(min(max(vmem_limit, 8 << 20), 32 << 20))

    return pl.pallas_call(
        _mlp_decoder_kernel,
        out_shape=jax.ShapeDtypeStruct((B, nclass), jnp.float32),
        grid=grid,
        in_specs=[
            pl.BlockSpec(memory_space=pltpu.MemorySpace.SMEM),    # skip scalars
            pl.BlockSpec((tile_b, hdim), lambda i: (i, 0)),       # batch tile
            resident(w1m), resident(w2m), resident(w3m),
            resident(w4m), resident(wfm),
            resident(bstack), resident(bfr),
        ],
        out_specs=pl.BlockSpec((tile_b, nclass), lambda i: (i, 0)),
        compiler_params=pltpu.CompilerParams(
            dimension_semantics=("parallel",),
            vmem_limit_bytes=vmem_limit),
        cost_estimate=cost,
    )(skips_adj, h, w1m, w2m, w3m, w4m, wfm, bstack, bfr)


if __name__ == "__main__":
    key = jax.random.PRNGKey(0)
    keys = jax.random.split(key, 12)

    # Small synthetic shapes; B=20 deliberately not a multiple of tile_b=8 so
    # the ragged-last-block path (pl.cdiv grid) is exercised.
    B, HDIM, NCLASS = 20, 32, 8

    def lin(kw, kb, fan_in, fan_out):
        lim = 1.0 / jnp.sqrt(jnp.float32(fan_in))
        w = jax.random.uniform(kw, (fan_in, fan_out), jnp.float32, -lim, lim)
        b = jax.random.uniform(kb, (fan_out,), jnp.float32, -lim, lim)
        return w, b

    w1, b1 = lin(keys[0], keys[1], HDIM, HIDDEN)
    w2, b2 = lin(keys[2], keys[3], HIDDEN, HIDDEN)
    w3, b3 = lin(keys[4], keys[5], HIDDEN, HIDDEN)
    w4, b4 = lin(keys[6], keys[7], HIDDEN, HIDDEN)
    wf, bf = lin(keys[8], keys[9], HIDDEN, NCLASS)
    skips = jax.random.uniform(keys[10], (6,), jnp.float32)  # 6x torch.rand(1)
    h = jax.random.normal(keys[11], (B, HDIM), jnp.float32)

    params = dict(w1=w1, b1=b1, w2=w2, b2=b2, w3=w3, b3=b3,
                  w4=w4, b4=b4, wf=wf, bf=bf, skips=skips)

    # Optimized path (bf16 matmuls, f32 accumulation).
    out_bf16 = jax.block_until_ready(mlp_decoder_forward(h, params, tile_b=8))
    # f32-matmul path for a tight numerical check of the kernel semantics.
    out_f32 = jax.block_until_ready(
        mlp_decoder_forward(h, params, tile_b=8, use_bf16=False))

    # Pure-JAX reference (original, unfolded parameterization).
    def ref(hx, p):
        s = p["skips"]
        hi = jax.lax.Precision.HIGHEST
        h1 = jnp.maximum(jnp.dot(hx, p["w1"], precision=hi) + p["b1"], 0.0)
        h2 = jnp.maximum(
            jnp.dot(h1 + s[0] * h1, p["w2"], precision=hi) + p["b2"], 0.0)
        h3 = jnp.maximum(
            jnp.dot(h2 + s[3] * h2 + s[1] * h1, p["w3"], precision=hi)
            + p["b3"], 0.0)
        h4 = jnp.maximum(
            jnp.dot(h3 + s[5] * h3 + s[4] * h2 + s[2] * h1, p["w4"],
                    precision=hi) + p["b4"], 0.0)
        return jax.nn.sigmoid(jnp.dot(h4, p["wf"], precision=hi) + p["bf"])

    expected = ref(h, params)
    assert out_bf16.shape == (B, NCLASS), out_bf16.shape
    assert out_f32.shape == (B, NCLASS), out_f32.shape

    # Tight check on the f32 path (validates semantics / skip folding).
    err_f32 = float(jnp.max(jnp.abs(out_f32 - expected)))
    assert jnp.allclose(out_f32, expected, rtol=1e-3, atol=5e-3), err_f32
    # Looser check on the bf16-matmul path (bf16 rounding of inputs only).
    err_bf16 = float(jnp.max(jnp.abs(out_bf16 - expected)))
    assert jnp.allclose(out_bf16, expected, rtol=2e-2, atol=2e-2), err_bf16

    print("KERNEL_OK")
</pallas_src>

<mosaic_0001>
module attributes {stable_mosaic.version = 11 : i64} {
  func.func @_mlp_decoder_kernel(%arg0: i32, %arg1: memref<3xf32, #tpu.memory_space<smem>>, %arg2: memref<8x32xf32, #tpu.memory_space<vmem>>, %arg3: memref<32x128xbf16, #tpu.memory_space<vmem>>, %arg4: memref<128x128xbf16, #tpu.memory_space<vmem>>, %arg5: memref<128x128xbf16, #tpu.memory_space<vmem>>, %arg6: memref<128x128xbf16, #tpu.memory_space<vmem>>, %arg7: memref<128x8xbf16, #tpu.memory_space<vmem>>, %arg8: memref<4x128xf32, #tpu.memory_space<vmem>>, %arg9: memref<1x8xf32, #tpu.memory_space<vmem>>, %arg10: memref<8x8xf32, #tpu.memory_space<vmem>>) attributes {dimension_semantics = [#tpu.dimension_semantics<parallel>], iteration_bounds = array<i64: 3>, scalar_prefetch = 0 : i64, scratch_operands = 0 : i64, tpu.core_type = #tpu.core_type<tc>, window_params = [{transform_indices = @transform_0, window_bounds = array<i64: 3>}, {transform_indices = @transform_1, window_bounds = array<i64: 8, 32>}, {pipeline_mode = #tpu.pipeline_mode<synchronous>, transform_indices = @transform_2, window_bounds = array<i64: 32, 128>}, {pipeline_mode = #tpu.pipeline_mode<synchronous>, transform_indices = @transform_3, window_bounds = array<i64: 128, 128>}, {pipeline_mode = #tpu.pipeline_mode<synchronous>, transform_indices = @transform_4, window_bounds = array<i64: 128, 128>}, {pipeline_mode = #tpu.pipeline_mode<synchronous>, transform_indices = @transform_5, window_bounds = array<i64: 128, 128>}, {pipeline_mode = #tpu.pipeline_mode<synchronous>, transform_indices = @transform_6, window_bounds = array<i64: 128, 8>}, {pipeline_mode = #tpu.pipeline_mode<synchronous>, transform_indices = @transform_7, window_bounds = array<i64: 4, 128>}, {pipeline_mode = #tpu.pipeline_mode<synchronous>, transform_indices = @transform_8, window_bounds = array<i64: 1, 8>}, {transform_indices = @transform_9, window_bounds = array<i64: 8, 8>}]} {
    %c0 = arith.constant 0 : index
    %0 = memref.load %arg1[%c0] : memref<3xf32, #tpu.memory_space<smem>>
    %c1 = arith.constant 1 : index
    %1 = memref.load %arg1[%c1] : memref<3xf32, #tpu.memory_space<smem>>
    %c2 = arith.constant 2 : index
    %2 = memref.load %arg1[%c2] : memref<3xf32, #tpu.memory_space<smem>>
    %c0_0 = arith.constant 0 : index
    %c0_1 = arith.constant 0 : index
    %3 = vector.load %arg2[%c0_0, %c0_1] : memref<8x32xf32, #tpu.memory_space<vmem>>, vector<8x32xf32>
    %4 = arith.truncf %3 : vector<8x32xf32> to vector<8x32xbf16>
    %c0_2 = arith.constant 0 : index
    %c0_3 = arith.constant 0 : index
    %5 = vector.load %arg3[%c0_2, %c0_3] : memref<32x128xbf16, #tpu.memory_space<vmem>>, vector<32x128xbf16>
    %cst = arith.constant dense<0.000000e+00> : vector<8x128xf32>
    %6 = tpu.matmul %4, %5, %cst {dimension_numbers = #tpu.dot_dimension_numbers<[1], [0], [0], [1], [0, 0, 1, 1], [], []>} : vector<8x32xbf16>, vector<32x128xbf16>, vector<8x128xf32> -> vector<8x128xf32>
    %c0_4 = arith.constant 0 : index
    %c0_5 = arith.constant 0 : index
    %7 = vector.load %arg8[%c0_4, %c0_5] : memref<4x128xf32, #tpu.memory_space<vmem>>, vector<1x128xf32>
    %8 = vector.broadcast %7 : vector<1x128xf32> to vector<8x128xf32>
    %9 = arith.addf %6, %8 : vector<8x128xf32>
    %cst_6 = arith.constant 0.000000e+00 : f32
    %10 = vector.broadcast %cst_6 : f32 to vector<8x128xf32>
    %11 = arith.maximumf %9, %10 : vector<8x128xf32>
    %12 = arith.truncf %11 : vector<8x128xf32> to vector<8x128xbf16>
    %c0_7 = arith.constant 0 : index
    %c0_8 = arith.constant 0 : index
    %13 = vector.load %arg4[%c0_7, %c0_8] : memref<128x128xbf16, #tpu.memory_space<vmem>>, vector<128x128xbf16>
    %cst_9 = arith.constant dense<0.000000e+00> : vector<8x128xf32>
    %14 = tpu.matmul %12, %13, %cst_9 {dimension_numbers = #tpu.dot_dimension_numbers<[1], [0], [0], [1], [0, 0, 1, 1], [], []>} : vector<8x128xbf16>, vector<128x128xbf16>, vector<8x128xf32> -> vector<8x128xf32>
    %c1_10 = arith.constant 1 : index
    %c0_11 = arith.constant 0 : index
    %15 = vector.load %arg8[%c1_10, %c0_11] : memref<4x128xf32, #tpu.memory_space<vmem>>, vector<1x128xf32>
    %16 = vector.broadcast %15 : vector<1x128xf32> to vector<8x128xf32>
    %17 = arith.addf %14, %16 : vector<8x128xf32>
    %cst_12 = arith.constant 0.000000e+00 : f32
    %18 = vector.broadcast %cst_12 : f32 to vector<8x128xf32>
    %19 = arith.maximumf %17, %18 : vector<8x128xf32>
    %20 = vector.broadcast %0 : f32 to vector<8x128xf32>
    %21 = arith.mulf %20, %11 : vector<8x128xf32>
    %22 = arith.addf %19, %21 : vector<8x128xf32>
    %23 = arith.truncf %22 : vector<8x128xf32> to vector<8x128xbf16>
    %c0_13 = arith.constant 0 : index
    %c0_14 = arith.constant 0 : index
    %24 = vector.load %arg5[%c0_13, %c0_14] : memref<128x128xbf16, #tpu.memory_space<vmem>>, vector<128x128xbf16>
    %cst_15 = arith.constant dense<0.000000e+00> : vector<8x128xf32>
    %25 = tpu.matmul %23, %24, %cst_15 {dimension_numbers = #tpu.dot_dimension_numbers<[1], [0], [0], [1], [0, 0, 1, 1], [], []>} : vector<8x128xbf16>, vector<128x128xbf16>, vector<8x128xf32> -> vector<8x128xf32>
    %c2_16 = arith.constant 2 : index
    %c0_17 = arith.constant 0 : index
    %26 = vector.load %arg8[%c2_16, %c0_17] : memref<4x128xf32, #tpu.memory_space<vmem>>, vector<1x128xf32>
    %27 = vector.broadcast %26 : vector<1x128xf32> to vector<8x128xf32>
    %28 = arith.addf %25, %27 : vector<8x128xf32>
    %cst_18 = arith.constant 0.000000e+00 : f32
    %29 = vector.broadcast %cst_18 : f32 to vector<8x128xf32>
    %30 = arith.maximumf %28, %29 : vector<8x128xf32>
    %31 = vector.broadcast %2 : f32 to vector<8x128xf32>
    %32 = arith.mulf %31, %19 : vector<8x128xf32>
    %33 = arith.addf %30, %32 : vector<8x128xf32>
    %34 = vector.broadcast %1 : f32 to vector<8x128xf32>
    %35 = arith.mulf %34, %11 : vector<8x128xf32>
    %36 = arith.addf %33, %35 : vector<8x128xf32>
    %37 = arith.truncf %36 : vector<8x128xf32> to vector<8x128xbf16>
    %c0_19 = arith.constant 0 : index
    %c0_20 = arith.constant 0 : index
    %38 = vector.load %arg6[%c0_19, %c0_20] : memref<128x128xbf16, #tpu.memory_space<vmem>>, vector<128x128xbf16>
    %cst_21 = arith.constant dense<0.000000e+00> : vector<8x128xf32>
    %39 = tpu.matmul %37, %38, %cst_21 {dimension_numbers = #tpu.dot_dimension_numbers<[1], [0], [0], [1], [0, 0, 1, 1], [], []>} : vector<8x128xbf16>, vector<128x128xbf16>, vector<8x128xf32> -> vector<8x128xf32>
    %c3 = arith.constant 3 : index
    %c0_22 = arith.constant 0 : index
    %40 = vector.load %arg8[%c3, %c0_22] : memref<4x128xf32, #tpu.memory_space<vmem>>, vector<1x128xf32>
    %41 = vector.broadcast %40 : vector<1x128xf32> to vector<8x128xf32>
    %42 = arith.addf %39, %41 : vector<8x128xf32>
    %cst_23 = arith.constant 0.000000e+00 : f32
    %43 = vector.broadcast %cst_23 : f32 to vector<8x128xf32>
    %44 = arith.maximumf %42, %43 : vector<8x128xf32>
    %45 = arith.truncf %44 : vector<8x128xf32> to vector<8x128xbf16>
    %c0_24 = arith.constant 0 : index
    %c0_25 = arith.constant 0 : index
    %46 = vector.load %arg7[%c0_24, %c0_25] : memref<128x8xbf16, #tpu.memory_space<vmem>>, vector<128x8xbf16>
    %cst_26 = arith.constant dense<0.000000e+00> : vector<8x8xf32>
    %47 = tpu.matmul %45, %46, %cst_26 {dimension_numbers = #tpu.dot_dimension_numbers<[1], [0], [0], [1], [0, 0, 1, 1], [], []>} : vector<8x128xbf16>, vector<128x8xbf16>, vector<8x8xf32> -> vector<8x8xf32>
    %c0_27 = arith.constant 0 : index
    %c0_28 = arith.constant 0 : index
    %48 = vector.load %arg9[%c0_27, %c0_28] : memref<1x8xf32, #tpu.memory_space<vmem>>, vector<1x8xf32>
    %49 = vector.broadcast %48 : vector<1x8xf32> to vector<8x8xf32>
    %50 = arith.addf %47, %49 : vector<8x8xf32>
    %51 = arith.negf %50 : vector<8x8xf32>
    %52 = math.exp %51 : vector<8x8xf32>
    %cst_29 = arith.constant 1.000000e+00 : f32
    %53 = vector.broadcast %cst_29 : f32 to vector<8x8xf32>
    %54 = arith.addf %53, %52 : vector<8x8xf32>
    %55 = arith.divf %53, %54 : vector<8x8xf32>
    %c0_30 = arith.constant 0 : index
    %c0_31 = arith.constant 0 : index
    %56 = vector.load %arg10[%c0_30, %c0_31] : memref<8x8xf32, #tpu.memory_space<vmem>>, vector<8x8xf32>
    tpu.vector_store %arg10[%c0_30, %c0_31], %55 {strides = array<i32>} : memref<8x8xf32, #tpu.memory_space<vmem>>, vector<8x8xf32>,
    return
  }
  func.func @transform_0(%arg0: i32) -> i32 {
    %c0_i32 = arith.constant 0 : i32
    %c0_i32_0 = arith.constant 0 : i32
    return %c0_i32 : i32
  }
  func.func @transform_1(%arg0: i32) -> (i32, i32) {
    %c0_i32 = arith.constant 0 : i32
    %c0_i32_0 = arith.constant 0 : i32
    return %arg0, %c0_i32 : i32, i32
  }
  func.func @transform_2(%arg0: i32) -> (i32, i32) {
    %c0_i32 = arith.constant 0 : i32
    %c0_i32_0 = arith.constant 0 : i32
    %c0_i32_1 = arith.constant 0 : i32
    return %c0_i32, %c0_i32_0 : i32, i32
  }
  func.func @transform_3(%arg0: i32) -> (i32, i32) {
    %c0_i32 = arith.constant 0 : i32
    %c0_i32_0 = arith.constant 0 : i32
    %c0_i32_1 = arith.constant 0 : i32
    return %c0_i32, %c0_i32_0 : i32, i32
  }
  func.func @transform_4(%arg0: i32) -> (i32, i32) {
    %c0_i32 = arith.constant 0 : i32
    %c0_i32_0 = arith.constant 0 : i32
    %c0_i32_1 = arith.constant 0 : i32
    return %c0_i32, %c0_i32_0 : i32, i32
  }
  func.func @transform_5(%arg0: i32) -> (i32, i32) {
    %c0_i32 = arith.constant 0 : i32
    %c0_i32_0 = arith.constant 0 : i32
    %c0_i32_1 = arith.constant 0 : i32
    return %c0_i32, %c0_i32_0 : i32, i32
  }
  func.func @transform_6(%arg0: i32) -> (i32, i32) {
    %c0_i32 = arith.constant 0 : i32
    %c0_i32_0 = arith.constant 0 : i32
    %c0_i32_1 = arith.constant 0 : i32
    return %c0_i32, %c0_i32_0 : i32, i32
  }
  func.func @transform_7(%arg0: i32) -> (i32, i32) {
    %c0_i32 = arith.constant 0 : i32
    %c0_i32_0 = arith.constant 0 : i32
    %c0_i32_1 = arith.constant 0 : i32
    return %c0_i32, %c0_i32_0 : i32, i32
  }
  func.func @transform_8(%arg0: i32) -> (i32, i32) {
    %c0_i32 = arith.constant 0 : i32
    %c0_i32_0 = arith.constant 0 : i32
    %c0_i32_1 = arith.constant 0 : i32
    return %c0_i32, %c0_i32_0 : i32, i32
  }
  func.func @transform_9(%arg0: i32) -> (i32, i32) {
    %c0_i32 = arith.constant 0 : i32
    %c0_i32_0 = arith.constant 0 : i32
    return %arg0, %c0_i32 : i32, i32
  }
}

</mosaic_0001>

<bundles_post_ra>
// kernel: tpu_custom_call.1
= control target key start
LH: loop header
LB: loop body
LE: loop exit
PB: predicated region body
PF: predicated region fallthrough
CT: control target
= control target key end

     0   :  { %14 = vsyncpa [#allocation4], 0  ;;  %s1868_s0 = inlined_call_operand.vmem [shape: f32[3], index: 0, kind: input, shape index: {}]   ;;  %s1869_s1 = inlined_call_operand.hbm [shape: f32[20,32], index: 1, kind: input, shape index: {}]   ;;  %s1870_s2 = inlined_call_operand.hbm [shape: bf16[32,128], index: 2, kind: input, shape index: {}]   ;;  %s1871_s3 = inlined_call_operand.vmem [shape: bf16[128,128], index: 3, kind: input, shape index: {}]   ;;  %s1872_s4 = inlined_call_operand.hbm [shape: bf16[128,128], index: 4, kind: input, shape index: {}]   ;;  %s1873_s5 = inlined_call_operand.hbm [shape: bf16[128,128], index: 5, kind: input, shape index: {}]   ;;  %s1874_s6 = inlined_call_operand.vmem [shape: bf16[128,8], index: 6, kind: input, shape index: {}]   ;;  %s1875_s7 = inlined_call_operand.vmem [shape: f32[4,128], index: 7, kind: input, shape index: {}]   ;;  %s1876_s8 = inlined_call_operand.vmem [shape: f32[1,8], index: 8, kind: input, shape index: {}]   ;;  %s1877_s9 = inlined_call_operand.vmem [shape: f32[20,8], index: 9, kind: output, shape index: {}]  }
   0x1   :  { %15 = vsyncpa [#allocation3], 0 }
   0x2   :  { %17 = vsyncpa [#allocation3 + $0x1], 0 }
   0x3   :  { %18 = vsyncpa [#allocation7], 0 }
   0x4   :  { %19 = vsyncpa [#allocation10], 0  ;;  %s1584_s30 = smov 0   ;;  %s1586_s10 = smov 0  }
   0x5   :  { %s1588_s11 = smov 0   ;;  %s1590_s12 = smov 0  }
   0x6 LB: > { %s1525_s13 = smov [#allocation6]   ;;  %s1605_s15 = sadd.s32 4294967295, %s1523_s12   ;;  %s1523_s12 = sphi %s1590_s12, %s1896_s12   ;;  %s1519_s11 = sphi %s1588_s11, %s1895_s11   ;;  %s1515_s10 = sphi %s1586_s10, %s1894_s10   ;;  %s1511_s30 = sphi %s1584_s30, %s1893_s30  }
   0x7   : > { %s273_s14 = sshll.u32 %s1525_s13, 4  ;;  %p1047_p0 = scmp.ge.s32.totalorder %s1523_s12, 1  ;;  %s274_s14 = int_to_ptr.vmem [resolvable:$true] %s273_s14 }
   0x8   : > { %p1878_p1 = scmp.eq.s32.totalorder %s1605_s15, 0  ;;  %p250_p2 = scmp.lt.s32.totalorder %s1523_s12, 4 }
   0x9   : > { %s263_s19 = sshll.u32 %s1868_s0, 4  ;;  %s1526_s21 = smov [#allocation8]   ;;  %s264_s19 = int_to_ptr.vmem [resolvable:$true] %s263_s19 }
   0xa   : > { %p1610_p3 = pnand %p1047_p0, %p250_p2  ;;  %s289_s22 = sshll.u32 %s1526_s21, 4  ;;  %s1625_s22 = int_to_ptr.vmem [resolvable:$true] %s289_s22 }
   0xb   : > { %s1367_s23 = scalar_lea.vmem %s274_s14, 256  ;;  %p1375_p10 = scmp.lt.s32.totalorder %s274_s14, %s274_s14 }
   0xc   : > { %s1881_s16 = scalar_select %p1610_p3, 1, 0 }
   0xd   : > { %p1252_p4 = pneg %p1610_p3  ;;  %p1368_p7 = scmp.ne.s32.totalorder %s274_s14, %s1367_s23 }
   0xe   : > { %p1376_p11 = scmp.lt.s32.totalorder %s1367_s23, %s1367_s23 }
   0xf   : > { %p1621_p5 = pnand %p1252_p4, %p1878_p1 }
  0x10   : > { %p1377_p12 = por %p1376_p11, %p1375_p10 }
  0x11   : > { %p1358_p6 = pneg %p1621_p5 }
  0x13   : > { %p1370_p8 = pnand %p1368_p7, %p1358_p6 }
  0x15   : > { %p1371_p9 = pneg %p1370_p8 }
  0x17   : > { %p1378_p13 = pnand %p1377_p12, %p1371_p9 }
  0x19   : > { %1381 = shalt.err (!%p1378_p13)
}
  0x1a   : > { %s1527_s24 = smov 64   ;;  %s1528_s25 = smov 4  }
  0x1b   : > { %1258 = dma.hbm_to_vmem [thread:$0]  (!%p1621_p5), %s1870_s2, 256, %s274_s14, [#allocation7], %s1527_s24, %s1527_s24, %s1528_s25  }
  0x1c   : > { %s1382_s28 = scalar_lea.vmem %s264_s19, 16  ;;  %p1390_p7 = scmp.lt.s32.totalorder %s264_s19, %s264_s19 }
  0x1d   : > { %p1383_p0 = scmp.ne.s32.totalorder %s264_s19, %s1382_s28  ;;  %p1391_p8 = scmp.lt.s32.totalorder %s1382_s28, %s1382_s28 }
  0x1f   : > { %p1385_p2 = pnand %p1383_p0, %p1358_p6  ;;  %p1392_p9 = por %p1391_p8, %p1390_p7 }
  0x21   : > { %p1386_p4 = pneg %p1385_p2 }
  0x23   : > { %p1393_p10 = pnand %p1392_p9, %p1386_p4 }
  0x25   : > { %1396 = shalt.err (!%p1393_p10)
}
  0x26   : > { %s1529_s29 = smov [#allocation2]   ;;  %s1408_s13 = scalar_lea.vmem %s1625_s22, 1024 }
  0x27   : > { %1255 = dma.vmem_to_smem (!%p1621_p5), %s264_s19, 16, %s1529_s29, [#allocation4]  }
  0x28   : > { %p1409_p11 = scmp.ne.s32.totalorder %s1625_s22, %s1408_s13  ;;  %p1416_p0 = scmp.lt.s32.totalorder %s1625_s22, %s1625_s22 }
  0x29   : > { %p1417_p2 = scmp.lt.s32.totalorder %s1408_s13, %s1408_s13 }
  0x2a   : > { %p1411_p12 = pnand %p1409_p11, %p1358_p6 }
  0x2b   : > { %p1418_p7 = por %p1417_p2, %p1416_p0 }
  0x2c   : > { %p1412_p13 = pneg %p1411_p12 }
  0x2e   : > { %p1419_p4 = pnand %p1418_p7, %p1412_p13 }
  0x30   : > { %1422 = shalt.err (!%p1419_p4)
}
  0x31   : > { %1261 = dma.hbm_to_vmem [thread:$0]  (!%p1621_p5), %s1872_s4, 1024, %s1625_s22, [#allocation7], %s1527_s24, %s1527_s24, %s1528_s25  }
  0x32   : > { %s1530_s18 = smov [#allocation9]  }
  0x33   : > { %s302_s19 = sshll.u32 %s1530_s18, 4  ;;  %s303_s19 = int_to_ptr.vmem [resolvable:$true] %s302_s19 }
  0x34   : > { %s1434_s21 = scalar_lea.vmem %s303_s19, 1024  ;;  %p1442_p11 = scmp.lt.s32.totalorder %s303_s19, %s303_s19 }
  0x35   : > { %p1435_p8 = scmp.ne.s32.totalorder %s303_s19, %s1434_s21  ;;  %p1443_p12 = scmp.lt.s32.totalorder %s1434_s21, %s1434_s21 }
  0x37   : > { %p1437_p9 = pnand %p1435_p8, %p1358_p6  ;;  %p1444_p13 = por %p1443_p12, %p1442_p11 }
  0x39   : > { %p1438_p10 = pneg %p1437_p9 }
  0x3b   : > { %p1445_p0 = pnand %p1444_p13, %p1438_p10 }
  0x3d   : > { %1448 = shalt.err (!%p1445_p0)
}
  0x3e   : > { %1264 = dma.hbm_to_vmem [thread:$0]  (!%p1621_p5), %s1873_s5, 1024, %s303_s19, [#allocation10], %s1527_s24, %s1527_s24, %s1528_s25  }
  0x3f   : > { %s1673_s20 = sadd.s32 1, %s1523_s12   ;;  %s53_s26 = sadd.s32 1, %s1519_s11 }
  0x40   : > { %s50_s27 = ssub.s32 %s1523_s12, %s1673_s20  ;;  %p60_p6 = scmp.ne.s32.totalorder %s1519_s11, %s1515_s10 }
  0x41   : > { %p51_p2 = scmp.eq.s32.totalorder %s50_s27, 0  ;;  %p61_p7 = scmp.eq.s32.totalorder %s1523_s12, 0 }
  0x42   : > { %p66_p4 = scmp.ne.s32.totalorder %s1515_s10, %s1511_s30  ;;  %p1273_p8 = scmp.lt.s32.totalorder %s1523_s12, 3 }
  0x43   : > { %s1685_s28 = scalar_select %p51_p2, %s1519_s11, %s53_s26  }
  0x44   : > { %p62_p9 = por %p61_p7, %p60_p6  ;;  %p1689_p10 = por %p1878_p1, %p66_p4 }
  0x45   : > { %s325_s13 = sand.u32 1, %s1519_s11   ;;  %s1054_s24 = sshll.u32 %s1523_s12, 7 }
  0x46   : > { %s1883_s29 = scalar_select %p1689_p10, 1, 0 }
  0x47   : > { %s1053_s25 = sshll.u32 %s325_s13, 3  ;;  %s1698_s18 = scalar_lea.hbm %s1869_s1, %s1054_s24 }
  0x48   : > { %s329_s30 = scalar_lea.vmem [#allocation5], %s1053_s25  ;;  %p1700_p5 = pnand %p1273_p8, %p62_p9 }
  0x49   : > { %s336_s19 = sshll.u32 %s329_s30, 4  ;;  %s326_s22 = scalar_lea.sflag [#allocation3], %s325_s13  ;;  %s337_s19 = int_to_ptr.vmem [resolvable:$true] %s336_s19 }
  0x4a   : > { %s1449_s23 = scalar_lea.hbm %s1698_s18, 128  ;;  %p1451_p12 = pneg %p1700_p5 }
  0x4b   : > { %p1450_p11 = scmp.ne.s32.totalorder %s1698_s18, %s1449_s23  ;;  %s1454_s27 = scalar_lea.hbm %s1869_s1, 384 }
  0x4c   : > { %p1455_p6 = scmp.lt.s32.totalorder %s1698_s18, %s1869_s1  ;;  %p1456_p2 = scmp.lt.s32.totalorder %s1454_s27, %s1449_s23 }
  0x4d   : > { %p1452_p13 = pnand %p1451_p12, %p1450_p11 }
  0x4e   : > { %p1457_p7 = por %p1456_p2, %p1455_p6 }
  0x4f   : > { %p1453_p0 = pneg %p1452_p13 }
  0x51   : > { %p1458_p4 = pnand %p1457_p7, %p1453_p0 }
  0x53   : > { %1461 = shalt.err (!%p1458_p4)
}
  0x54   : > { %s1462_s14 = scalar_lea.vmem %s337_s19, 128  ;;  %s1531_s13 = smov [#allocation5]  }
  0x55   : > { %p1463_p8 = scmp.ne.s32.totalorder %s337_s19, %s1462_s14  ;;  %s1467_s17 = sshll.u32 %s1531_s13, 4  ;;  %s1468_s17 = int_to_ptr.vmem [resolvable:$false] %s1467_s17 }
  0x56   : > { %s1469_s30 = scalar_lea.vmem %s1468_s17, 256  ;;  %p1470_p11 = scmp.lt.s32.totalorder %s337_s19, %s1468_s17 }
  0x57   : > { %p1465_p9 = pnand %p1463_p8, %p1451_p12  ;;  %p1471_p13 = scmp.lt.s32.totalorder %s1469_s30, %s1462_s14 }
  0x59   : > { %p1466_p1 = pneg %p1465_p9  ;;  %p1472_p10 = por %p1471_p13, %p1470_p11 }
  0x5b   : > { %p1473_p3 = pnand %p1472_p10, %p1466_p1 }
  0x5d   : > { %1476 = shalt.err (!%p1473_p3)
}
  0x5e   : > { %1268 = dma.hbm_to_vmem [thread:$0]  (!%p1700_p5), %s1698_s18, 128, %s337_s19, %s326_s22  }
  0x5f   : > { %p1885_p0 = scmp.ne.s32.totalorder %s1881_s16, 0 }
  0x60   : > { %p1886_p6 = scmp.eq.s32.totalorder (!%p1885_p0), %s1605_s15, 0 }
  0x61   : > { %345 = sbr.rel (%p1885_p0) target bundleno = 1155 (0x483), region = 56 }
  0x66   : > { %1494 = dma.done.wait (%p1886_p6), [#allocation4], 16   ;;  %p1887_p12 = pmov %p1886_p6 }
  0x67   : > { %s351_s23 = sand.u32 1, %s1515_s10   ;;  %p1888_p1 = scmp.ne.s32.totalorder %s1883_s29, 0 }
  0x68   : > { %1496 = vsyncadd (%p1887_p12), [#allocation4], 4294967280  ;;  %s1057_s12 = sshll.u32 %s351_s23, 3  ;;  %s352_s26 = scalar_lea.sflag [#allocation3], %s351_s23 }
  0x69   : > { %s355_s27 = scalar_lea.vmem [#allocation5], %s1057_s12 }
  0x6a   : > { %1498 = dma.done.wait (%p1888_p1), %s352_s26, 128  }
  0x6b   : > { %1500 = vsyncadd (%p1888_p1), %s352_s26, 4294967168  ;;  %p1889_p3 = pmov %p1886_p6 }
  0x6d   : > { %1502 = dma.done.wait (%p1889_p3), [#allocation7], 1280   ;;  %p1890_p10 = pmov %p1889_p3 }
  0x6e   : > { %p1891_p5 = pmov %p1889_p3 }
  0x6f   : > { %1504 = vsyncadd (%p1890_p10), [#allocation7], 4294966016 }
  0x70   : > { %1506 = dma.done.wait (%p1891_p5), [#allocation10], 1024   ;;  %p1892_p2 = pmov %p1889_p3 }
  0x72   : > { %1508 = vsyncadd (%p1892_p2), [#allocation10], 4294966272 }
  0x73   : > { %372 = sfence }
  0x74   : > { %v1318_v0 = vld [vmem:[#allocation6 + $0x8] sm:$0xff]   ;;  %v1532_v1 = vmov 0.0   ;;  %v1319_v2 = vld [vmem:[#allocation6] sm:$0xff]   ;;  %vm1533_vm0 = vmmov 0   ;;  %v410_v3 = vld [vmem:[%s355_s27] sm:$0xff]  ;;  %vm433_vm1 = vcmask 261120  }
  0x75   : > { %1146 = vmatprep.subr.bf16.mxu0 %v1532_v1  ;;  %1154 = vmatprep.subr.bf16.mxu1 %v1532_v1  ;;  %v1320_v4 = vld [vmem:[%s1871_s3 + $0x38] sm:$0xff]   ;;  %v411_v5 = vpack.c.bf16 %v410_v3, %v410_v3  ;;  %v1321_v6 = vld [vmem:[%s1871_s3 + $0x30] sm:$0xff]   ;;  %v1322_v7 = vld [vmem:[%s1871_s3 + $0x28] sm:$0xff]   ;;  %s407_s18 = sld [smem:[#allocation2]]  ;;  %p402_p7 = scmp.lt.s32.totalorder %s1605_s15, 2  ;;  %vm938_vm2 = vcmask 64512  }
  0x76   : > { %1147 = vmatpush3.bf16.msra.mxu0 %v1318_v0  ;;  %1150 = vmatprep.mubr.msk.bf16.mxu0 %vm1533_vm0, %v1532_v1  ;;  %v1323_v8 = vld [vmem:[%s1871_s3 + $0x20] sm:$0xff]   ;;  %v1324_v9 = vld [vmem:[%s1871_s3 + $0x18] sm:$0xff]   ;;  %v1325_v10 = vld [vmem:[%s1871_s3 + $0x10] sm:$0xff]   ;;  %s1063_s29 = sld [smem:[#allocation2 + $0x2]] }
  0x77   : > { %1148 = vmatprep.subr.bf16.mxu0 %v1532_v1  ;;  %1170 = vmatprep.mubr.msk.bf16.mxu1 %vm1533_vm0, %v1532_v1  ;;  %v1326_v11 = vld [vmem:[%s1871_s3 + $0x8] sm:$0xff]   ;;  %v1327_v12 = vld [vmem:[%s1871_s3] sm:$0xff]   ;;  %v1328_v13 = vld [vmem:[#allocation8 + $0x38] sm:$0xff]   ;;  %s1898_s15 = smov (!%p402_p7, %s1605_s15), 2 }
  0x78   : > { %1155 = vmatpush3.bf16.msra.mxu1 %v1320_v4  ;;  %v1329_v14 = vld [vmem:[#allocation8 + $0x30] sm:$0xff]   ;;  %v1330_v15 = vld [vmem:[#allocation8 + $0x28] sm:$0xff]   ;;  %v1331_v16 = vld [vmem:[#allocation8 + $0x20] sm:$0xff]   ;;  %s1061_s12 = sshll.u32 %s1898_s15, 3 }
  0x79   : > { %1156 = vmatprep.subr.bf16.mxu1 %v1532_v1  ;;  %v1332_v17 = vld [vmem:[#allocation8 + $0x18] sm:$0xff]   ;;  %v1333_v18 = vld [vmem:[#allocation8 + $0x10] sm:$0xff]   ;;  %v1064_v19 = vld [vmem:[%s1875_s7] ss:$0 sm:$0xff]  ;;  %s405_s16 = scalar_lea.vmem %s1877_s9, %s1061_s12 }
  0x7a   : > { %1149 = vmatpush3.bf16.msra.mxu0 %v1319_v2  ;;  %v1334_v27 = vld [vmem:[#allocation8 + $0x8] sm:$0xff]   ;;  %v1335_v28 = vld [vmem:[#allocation8] sm:$0xff]   ;;  %v1336_v29 = vld [vmem:[#allocation9 + $0x38] sm:$0xff]  }
  0x7b   : > { %1174 = vmatprep.subr.bf16.mxu0 %v1532_v1  ;;  %v1337_v30 = vld [vmem:[#allocation9 + $0x30] sm:$0xff]   ;;  %v1338_v31 = vld [vmem:[#allocation9 + $0x28] sm:$0xff]   ;;  %v1339_v32 = vld [vmem:[#allocation9 + $0x20] sm:$0xff]   ;;  %v589_v36 = vstv %s407_s18  ;;  %s1062_s18 = sld [smem:[#allocation2 + $0x1]] }
  0x7c   : > { %1157 = vmatpush3.bf16.msra.mxu1 %v1321_v6  ;;  %v1340_v33 = vld [vmem:[#allocation9 + $0x18] sm:$0xff]   ;;  %v1068_v34 = vld [vmem:[%s1875_s7 + $0x1] ss:$0 sm:$0xff]  ;;  %v1341_v45 = vld [vmem:[#allocation9 + $0x10] sm:$0xff]   ;;  %v703_v55 = vstv %s1063_s29 }
  0x7d   : > { %1151 = vmatmul.mubr.msk.bf16.vlgmr.msra.gmra.mxu0 %vm433_vm1, %v411_v5  ;;  %1158 = vmatprep.subr.bf16.mxu1 %v1532_v1  ;;  %v1342_v46 = vld [vmem:[#allocation9 + $0x8] sm:$0xff]   ;;  %v1343_v47 = vld [vmem:[#allocation9] sm:$0xff]   ;;  %v1344_v48 = vld [vmem:[%s1874_s6 + $0x38] sm:$0xff]  }
  0x7e   : > { %1190 = vmatprep.mubr.msk.bf16.mxu0 %vm1533_vm0, %v1532_v1  ;;  %1175 = vmatpush3.bf16.msra.mxu0 %v1328_v13  ;;  %v1345_v49 = vld [vmem:[%s1874_s6 + $0x30] sm:$0xff]   ;;  %v1346_v50 = vld [vmem:[%s1874_s6 + $0x28] sm:$0xff]   ;;  %v1347_v51 = vld [vmem:[%s1874_s6 + $0x20] sm:$0xff]  }
  0x7f   : > { %1176 = vmatprep.subr.bf16.mxu0 %v1532_v1  ;;  %v1348_v52 = vld [vmem:[%s1874_s6 + $0x18] sm:$0xff]   ;;  %v1349_v53 = vld [vmem:[%s1874_s6 + $0x10] sm:$0xff]   ;;  %v1077_v54 = vld [vmem:[%s1875_s7 + $0x2] ss:$0 sm:$0xff] }
  0x80   : > { %1159 = vmatpush3.bf16.msra.mxu1 %v1322_v7  ;;  %v1350_v5 = vld [vmem:[%s1874_s6 + $0x8] sm:$0xff]   ;;  %v1351_v6 = vld [vmem:[%s1874_s6] sm:$0xff]  }
  0x81   : > { %1160 = vmatprep.subr.bf16.mxu1 %v1532_v1  ;;  %v706_v58 = vstv %s1062_s18  ;;  %v1086_v7 = vld [vmem:[%s1875_s7 + $0x3] ss:$0 sm:$0xff] }
  0x82   : > { %1177 = vmatpush3.bf16.msra.mxu0 %v1329_v14 }
  0x83   : > { %1178 = vmatprep.subr.bf16.mxu0 %v1532_v1 }
  0x84   : > { %1161 = vmatpush3.bf16.msra.mxu1 %v1323_v8 }
  0x85   : > { %1162 = vmatprep.subr.bf16.mxu1 %v1532_v1 }
  0x86   : > { %1179 = vmatpush3.bf16.msra.mxu0 %v1330_v15 }
  0x87   : > { %1180 = vmatprep.subr.bf16.mxu0 %v1532_v1 }
  0x88   : > { %1163 = vmatpush3.bf16.msra.mxu1 %v1324_v9 }
  0x89   : > { %1164 = vmatprep.subr.bf16.mxu1 %v1532_v1 }
  0x8a   : > { %1181 = vmatpush3.bf16.msra.mxu0 %v1331_v16 }
  0x8b   : > { %1182 = vmatprep.subr.bf16.mxu0 %v1532_v1 }
  0x8c   : > { %1165 = vmatpush3.bf16.msra.mxu1 %v1325_v10 }
  0x8d   : > { %1166 = vmatprep.subr.bf16.mxu1 %v1532_v1 }
  0x8e   : > { %1183 = vmatpush3.bf16.msra.mxu0 %v1332_v17 }
  0x8f   : > { %1184 = vmatprep.subr.bf16.mxu0 %v1532_v1 }
  0x90   : > { %1167 = vmatpush3.bf16.msra.mxu1 %v1326_v11 }
  0x91   : > { %1168 = vmatprep.subr.bf16.mxu1 %v1532_v1 }
  0x92   : > { %1185 = vmatpush3.bf16.msra.mxu0 %v1333_v18 }
  0x93   : > { %1186 = vmatprep.subr.bf16.mxu0 %v1532_v1 }
  0x94   : > { %1169 = vmatpush3.bf16.msra.mxu1 %v1327_v12 }
  0x95   : > { %1194 = vmatprep.subr.bf16.mxu1 %v1532_v1 }
  0x96   : > { %1187 = vmatpush3.bf16.msra.mxu0 %v1334_v27 }
  0x97   : > { %1188 = vmatprep.subr.bf16.mxu0 %v1532_v1 }
  0x9a   : > { %1189 = vmatpush3.bf16.msra.mxu0 %v1335_v28 }
  0x9b   : > { %1214 = vmatprep.subr.bf16.mxu0 %v1532_v1 }
 0x13d   : > { %v471_v20 = vpop.f32.mrf.mxu0 }
 0x13e   : > { %v472_v21 = vadd.f32 %v1064_v19, %v471_v20 }
 0x13f   : > { %v1152_v22 = vpop.f32.mrf.mxu0 }
 0x140   : > { %v1788_v23 = vmax.f32 %v472_v21, 0.0 }
 0x141   : > { %v474_v24 = vpop.f32.mrf.mxu0 }
 0x142   : > { %v478_v25 = vpack.c.bf16 %v1788_v23, %v1788_v23  ;;  %v590_v40 = vmul.f32 %v589_v36, %v1788_v23  ;;  %v707_v63 = vmul.f32 %v706_v58, %v1788_v23 }
 0x143   : > { %v1153_v26 = vpop.f32.mrf.mxu0 }
 0x144   : > { %1171 = vmatmul.mubr.bf16.vlgmr.msra.gmra.mxu1 %v478_v25 }
 0x145   : > { %1210 = vmatprep.mubr.msk.bf16.mxu1 %vm1533_vm0, %v1532_v1  ;;  %1195 = vmatpush3.bf16.msra.mxu1 %v1336_v29 }
 0x146   : > { %1196 = vmatprep.subr.bf16.mxu1 %v1532_v1 }
 0x149   : > { %1197 = vmatpush3.bf16.msra.mxu1 %v1337_v30 }
 0x14a   : > { %1198 = vmatprep.subr.bf16.mxu1 %v1532_v1 }
 0x14d   : > { %1199 = vmatpush3.bf16.msra.mxu1 %v1338_v31 }
 0x14e   : > { %1200 = vmatprep.subr.bf16.mxu1 %v1532_v1 }
 0x151   : > { %1201 = vmatpush3.bf16.msra.mxu1 %v1339_v32 }
 0x152   : > { %1202 = vmatprep.subr.bf16.mxu1 %v1532_v1 }
 0x155   : > { %1203 = vmatpush3.bf16.msra.mxu1 %v1340_v33 }
 0x156   : > { %1204 = vmatprep.subr.bf16.mxu1 %v1532_v1 }
 0x159   : > { %1205 = vmatpush3.bf16.msra.mxu1 %v1341_v45 }
 0x15a   : > { %1206 = vmatprep.subr.bf16.mxu1 %v1532_v1 }
 0x15d   : > { %1207 = vmatpush3.bf16.msra.mxu1 %v1342_v46 }
 0x15e   : > { %1208 = vmatprep.subr.bf16.mxu1 %v1532_v1 }
 0x161   : > { %1209 = vmatpush3.bf16.msra.mxu1 %v1343_v47 }
 0x204   : > { %v582_v35 = vpop.f32.mrf.mxu1 }
 0x205   : > { %v583_v37 = vadd.f32 %v1068_v34, %v582_v35 }
 0x206   : > { %v1172_v38 = vpop.f32.mrf.mxu1 }
 0x207   : > { %v588_v39 = vmax.f32 %v583_v37, 0.0 }
 0x208   : > { %v585_v41 = vpop.f32.mrf.mxu1 }
 0x209   : > { %v591_v42 = vadd.f32 %v590_v40, %v588_v39  ;;  %v704_v60 = vmul.f32 %v703_v55, %v588_v39 }
 0x20a   : > { %v1173_v43 = vpop.f32.mrf.mxu1 }
 0x20b   : > { %v592_v44 = vpack.c.bf16 %v591_v42, %v591_v42 }
 0x20d   : > { %1191 = vmatmul.mubr.bf16.vlgmr.msra.gmra.mxu0 %v592_v44 }
 0x20e   : > { %1230 = vmatprep.mubr.msk.bf16.mxu0 %vm1533_vm0, %v1532_v1  ;;  %1215 = vmatpush3.bf16.msra.mxu0 %v1344_v48 }
 0x20f   : > { %1216 = vmatprep.subr.bf16.mxu0 %v1532_v1 }
 0x212   : > { %1217 = vmatpush3.bf16.msra.mxu0 %v1345_v49 }
 0x213   : > { %1218 = vmatprep.subr.bf16.mxu0 %v1532_v1 }
 0x216   : > { %1219 = vmatpush3.bf16.msra.mxu0 %v1346_v50 }
 0x217   : > { %1220 = vmatprep.subr.bf16.mxu0 %v1532_v1 }
 0x21a   : > { %1221 = vmatpush3.bf16.msra.mxu0 %v1347_v51 }
 0x21b   : > { %1222 = vmatprep.subr.bf16.mxu0 %v1532_v1 }
 0x21e   : > { %1223 = vmatpush3.bf16.msra.mxu0 %v1348_v52 }
 0x21f   : > { %1224 = vmatprep.subr.bf16.mxu0 %v1532_v1 }
 0x222   : > { %1225 = vmatpush3.bf16.msra.mxu0 %v1349_v53 }
 0x223   : > { %1226 = vmatprep.subr.bf16.mxu0 %v1532_v1 }
 0x226   : > { %1227 = vmatpush3.bf16.msra.mxu0 %v1350_v5 }
 0x227   : > { %1228 = vmatprep.subr.bf16.mxu0 %v1532_v1  ;;  %v1095_v1 = vld [vmem:[%s1876_s8] ss:$0 sm:$0xff] }
 0x22a   : > { %1229 = vmatpush3.bf16.msra.mxu0 %v1351_v6 }
 0x2cd   : > { %v696_v56 = vpop.f32.mrf.mxu0 }
 0x2ce   : > { %v697_v57 = vadd.f32 %v1077_v54, %v696_v56 }
 0x2cf   : > { %v1192_v59 = vpop.f32.mrf.mxu0 }
 0x2d0   : > { %v702_v61 = vmax.f32 %v697_v57, 0.0 }
 0x2d1   : > { %v699_v62 = vpop.f32.mrf.mxu0 }
 0x2d2   : > { %v705_v0 = vadd.f32 %v704_v60, %v702_v61 }
 0x2d3   : > { %v1193_v2 = vpop.f32.mrf.mxu0 }
 0x2d4   : > { %v708_v3 = vadd.f32 %v707_v63, %v705_v0 }
 0x2d6   : > { %v709_v4 = vpack.c.bf16 %v708_v3, %v708_v3 }
 0x2d8   : > { %1211 = vmatmul.mubr.bf16.vlgmr.msra.gmra.mxu1 %v709_v4 }
 0x398   : > { %v813_v8 = vpop.f32.mrf.mxu1 }
 0x399   : > { %v814_v9 = vadd.f32 %v1086_v7, %v813_v8 }
 0x39a   : > { %v1212_v10 = vpop.f32.mrf.mxu1 }
 0x39b   : > { %v819_v11 = vmax.f32 %v814_v9, 0.0 }
 0x39c   : > { %v816_v12 = vpop.f32.mrf.mxu1 }
 0x39d   : > { %v820_v13 = vpack.c.bf16 %v819_v11, %v819_v11 }
 0x39e   : > { %v1213_v14 = vpop.f32.mrf.mxu1 }
 0x39f   : > { %1231 = vmatmul.mubr.bf16.vlgmr.msra.gmra.mxu0 %v820_v13 }
 0x45f   : > { %v926_v15 = vpop.f32.mrf.mxu0 }
 0x460   : > { %v927_v16 = vadd.f32 %v1095_v1, %v926_v15 }
 0x461   : > { %v1232_v17 = vpop.f32.mrf.mxu0 }
 0x462   : > { %v1104_v18 = vmul.f32 -1.442695, %v927_v16 }
 0x463   : > { %v929_v19 = vpop.f32.mrf.mxu0 }
 0x464   : > { %1352 = vpow2.f32 %v1104_v18 }
 0x465   : > { %v1233_v20 = vpop.f32.mrf.mxu0 }
 0x471   : > { %v1353_v21 = vpop.eup %1352 }
 0x472   : > { %v935_v22 = vadd.f32 1.0, %v1353_v21 }
 0x474   : > { %1354 = vrcp.f32 %v935_v22 }
 0x481   : > { %v1355_v23 = vpop.eup %1354 }
 0x482   : > { %939 = vst.msk [vmem:[%s405_s16] sm:$0xff] %vm938_vm2, %v1355_v23 }
 0x483 PF: > { %p22_p4 = scmp.ge.s32.totalorder %s1673_s20, 5   ;;  %s1893_s30 = smov %s1515_s10 }
 0x484   : > { %s1894_s10 = smov %s1519_s11  ;;  %s1895_s11 = smov %s1685_s28 }
 0x485   : > { %s1896_s12 = smov %s1673_s20  ;;  %24 = sbr.rel (!%p22_p4) target bundleno = 6 (0x6), region = 113 }
 0x48a   :  { %959 = vsyncpa [#allocation3], 1 }
 0x48b   :  { %961 = vsyncpa [#allocation3 + $0x1], 1 }
 0x48c   :  { %962 = vsyncpa [#allocation7], 1 }
 0x48d   :  { %963 = vsyncpa [#allocation10], 1 }
 0x48e   :  { %964 = vsyncpa [#allocation4], 1 }
 0x48f   :  { %966 = vsyncpa [#allocation4 + $0x1], 1 }

</bundles_post_ra>
